<compile_context>
chip_gen: v5e
topology: v5e:2x2
jax: 0.10.0
libtpu: 0.0.40
codegen_flags: <defaults>
</compile_context>

<pallas_src>
import math
import functools

import jax
import jax.numpy as jnp
from jax import lax
from jax.experimental import pallas as pl
from jax.experimental.pallas import tpu as pltpu


_MASK_VALUE = -0.7 * float(jnp.finfo(jnp.float32).max)  # robust "-inf" (exp -> 0)
_STAT_LANES = 128                                        # lane-dense m/l scratch


# --------------------------------------------------------------------------- #
# Pre-pass: fused linear projection  out = inp @ W + b                         #
# --------------------------------------------------------------------------- #
def _projection_kernel(x_ref, w_ref, b_ref, o_ref):
    o_ref[...] = (jnp.dot(x_ref[...], w_ref[...],
                          preferred_element_type=jnp.float32)
                  + b_ref[...]).astype(o_ref.dtype)


def _project(x, w, b, *, out_dtype, row_tile, sublane):
    seq, emb = x.shape
    width = w.shape[1]
    tr = _pick_tile(seq, row_tile, sublane)
    return pl.pallas_call(
        _projection_kernel,
        out_shape=jax.ShapeDtypeStruct((seq, width), out_dtype),
        grid_spec=pltpu.PrefetchScalarGridSpec(
            num_scalar_prefetch=0,
            grid=(seq // tr,),
            in_specs=[
                pl.BlockSpec((tr, emb), lambda i: (i, 0)),      # activations
                pl.BlockSpec((emb, width), lambda i: (0, 0)),   # weights (resident)
                pl.BlockSpec((1, width), lambda i: (0, 0)),     # bias (resident)
            ],
            out_specs=pl.BlockSpec((tr, width), lambda i: (i, 0)),
        ),
        compiler_params=pltpu.CompilerParams(
            dimension_semantics=("parallel",)),
    )(x, w, b)


# --------------------------------------------------------------------------- #
# Flash-attention kernel (online softmax over kv blocks)                       #
# --------------------------------------------------------------------------- #
def _flash_attention_kernel(q_ref, k_ref, v_ref, o_ref,
                            m_scr, l_scr, acc_scr, *, masked, tq, tk):
    qi = pl.program_id(0)   # q-tile index   ("parallel")
    ki = pl.program_id(1)   # kv-tile index  ("arbitrary" reduction, innermost)

    @pl.when(ki == 0)
    def _init():
        m_scr[...] = jnp.full(m_scr.shape, _MASK_VALUE, m_scr.dtype)
        l_scr[...] = jnp.zeros(l_scr.shape, l_scr.dtype)
        acc_scr[...] = jnp.zeros(acc_scr.shape, acc_scr.dtype)

    def _attend():
        # Scores: contract last dims (no explicit K transpose / XLU work).
        s = lax.dot_general(q_ref[...], k_ref[...],
                            dimension_numbers=(((1,), (1,)), ((), ())),
                            preferred_element_type=jnp.float32)

        if masked:
            # Apply the causal mask only on blocks intersecting the diagonal;
            # interior (fully-unmasked) blocks skip the iota/compare/where.
            def _apply_causal_mask(sv):
                rows = qi * tq + lax.broadcasted_iota(jnp.int32, sv.shape, 0)
                cols = ki * tk + lax.broadcasted_iota(jnp.int32, sv.shape, 1)
                return jnp.where(cols > rows, _MASK_VALUE, sv)

            on_diagonal = (ki * tk + tk - 1) > (qi * tq)
            s = lax.cond(on_diagonal, _apply_causal_mask, lambda sv: sv, s)

        # Online-softmax update (stats kept lane-dense).
        m_prev = m_scr[...]
        l_prev = l_scr[...]
        m_new = jnp.maximum(m_prev, jnp.max(s, axis=-1, keepdims=True))
        alpha = jnp.exp(m_prev - m_new)
        p = jnp.exp(s - m_new[:, 0:1])
        l_scr[...] = alpha * l_prev + jnp.sum(p, axis=-1, keepdims=True)
        acc_scr[...] = acc_scr[...] * alpha[:, 0:1] + jnp.dot(
            p.astype(v_ref.dtype), v_ref[...],
            preferred_element_type=jnp.float32)
        m_scr[...] = m_new

    if masked:
        # Skip KV blocks entirely above the diagonal (their DMA is also
        # suppressed by the clamped index_map in the wrapper).
        pl.when(ki * tk <= qi * tq + tq - 1)(_attend)
    else:
        _attend()

    @pl.when(ki == pl.num_programs(1) - 1)
    def _finalize():
        approx = jnp.dtype(o_ref.dtype) == jnp.dtype(jnp.bfloat16)
        inv_l = pl.reciprocal(l_scr[:, 0:1], approx=approx)
        o_ref[...] = (acc_scr[...] * inv_l).astype(o_ref.dtype)


# --------------------------------------------------------------------------- #
# Tiling helpers                                                               #
# --------------------------------------------------------------------------- #
def _pick_tile(n, preferred, multiple):
    """Largest multiple-of-`multiple` tile <= preferred dividing n, else n."""
    if n <= preferred:
        return n
    t = (preferred // multiple) * multiple
    while t >= multiple:
        if n % t == 0:
            return t
        t -= multiple
    return n


# --------------------------------------------------------------------------- #
# Public wrapper                                                               #
# --------------------------------------------------------------------------- #
def self_attention(x, y, z, wq, wk, wv, bq, bk, bv, *, masked=False,
                   q_tile=512, kv_tile=512):
    """Pallas TPU forward pass matching the PyTorch SelfAttention module.

    Layout: x,y,z (seq, embed); Wq/Wk/Wv (embed, linear) (pre-transposed vs
    nn.Linear); bq/bk/bv (linear,) or (1, linear); output (seq_q, linear).
    """
    seq_q, emb = x.shape
    seq_k = y.shape[0]
    lin = wq.shape[1]
    out_dtype = x.dtype
    compute_dtype = x.dtype
    sub = 16 if jnp.dtype(compute_dtype) == jnp.dtype(jnp.bfloat16) else 8

    # Reference scales scores by 1/sqrt(#query rows) -- GLOBAL seq_q, a quirk
    # of the original module (NOT 1/sqrt(head_dim)).  Fold it into Wq/bq so the
    # queries arrive pre-scaled and no per-step score scaling is needed.
    scale = 1.0 / math.sqrt(float(seq_q))
    wq = wq * scale
    bq = jnp.reshape(bq, (1, -1)) * scale
    bk = jnp.reshape(bk, (1, -1))
    bv = jnp.reshape(bv, (1, -1))

    # Lane-dense padding of the projection output dim (exact: zero columns
    # contribute 0 to Q.K^T and produce 0 output columns sliced off below).
    lin_p = ((lin + 127) // 128) * 128
    pad = lin_p - lin
    if pad:
        wq = jnp.pad(wq, ((0, 0), (0, pad)))
        wk = jnp.pad(wk, ((0, 0), (0, pad)))
        wv = jnp.pad(wv, ((0, 0), (0, pad)))
        bq = jnp.pad(bq, ((0, 0), (0, pad)))
        bk = jnp.pad(bk, ((0, 0), (0, pad)))
        bv = jnp.pad(bv, ((0, 0), (0, pad)))

    # ---- Pre-pass: project Q/K/V once (K/V are never re-projected per q-tile).
    if x is y and x is z:
        # Fused QKV projection: one GEMM, one weight DMA, 3x wider MXU N.
        w_all = jnp.concatenate([wq, wk, wv], axis=1)
        b_all = jnp.concatenate([bq, bk, bv], axis=1)
        qkv = _project(x, w_all, b_all, out_dtype=compute_dtype,
                       row_tile=q_tile, sublane=sub)
        q = qkv[:, :lin_p]
        k = qkv[:, lin_p:2 * lin_p]
        v = qkv[:, 2 * lin_p:]
    else:
        q = _project(x, wq, bq, out_dtype=compute_dtype,
                     row_tile=q_tile, sublane=sub)
        k = _project(y, wk, bk, out_dtype=compute_dtype,
                     row_tile=kv_tile, sublane=sub)
        v = _project(z, wv, bv, out_dtype=compute_dtype,
                     row_tile=kv_tile, sublane=sub)

    # ---- Flash-attention tile selection.
    tq = _pick_tile(seq_q, q_tile, sub)
    if seq_q // tq < 2 and seq_q >= 256:
        # Prefer >= 2 q tiles so the "parallel" axis can feed both TensorCores
        # on v7x (megacore) without sacrificing too much tile size.
        tq_half = _pick_tile(seq_q, max(tq // 2, 128), sub)
        if tq_half >= 128 and seq_q % tq_half == 0:
            tq = tq_half
    tk = _pick_tile(seq_k, kv_tile, 128)      # keep tk a multiple of 128
    if tk > kv_tile:                          # no 128-multiple divisor found
        tk = _pick_tile(seq_k, kv_tile, sub)

    grid = (seq_q // tq, seq_k // tk)

    if masked:
        def kv_map(qi, ki):
            # Clamp fully-masked kv blocks to the last block intersecting the
            # diagonal for this qi: skipped iterations reuse the same block
            # index, so Pallas issues no new DMA for them.
            return (jnp.minimum(ki, (qi * tq + tq - 1) // tk), 0)
    else:
        def kv_map(qi, ki):
            return (ki, 0)

    # VMEM budget derived from the working set; capped at 48 MiB which is safe
    # on every generation including v7x's 64 MiB per-TC VMEM.
    csize = jnp.dtype(compute_dtype).itemsize
    osize = jnp.dtype(out_dtype).itemsize
    working_set = (2 * tq * lin_p * csize          # Q tile (double-buffered)
                   + 2 * 2 * tk * lin_p * csize    # K, V tiles (double-buffered)
                   + 2 * tq * lin_p * osize        # output tile (double-buffered)
                   + tq * lin_p * 4                # acc scratch
                   + 2 * tq * _STAT_LANES * 4)     # m / l scratch
    vmem_limit = int(min(max(2 * working_set, 32 * 1024 * 1024),
                         48 * 1024 * 1024))

    kernel = functools.partial(_flash_attention_kernel,
                               masked=masked, tq=tq, tk=tk)

    out_padded = pl.pallas_call(
        kernel,
        out_shape=jax.ShapeDtypeStruct((seq_q, lin_p), out_dtype),
        grid_spec=pltpu.PrefetchScalarGridSpec(
            num_scalar_prefetch=0,
            grid=grid,
            in_specs=[
                pl.BlockSpec((tq, lin_p), lambda qi, ki: (qi, 0)),   # Q
                pl.BlockSpec((tk, lin_p), kv_map),                   # K
                pl.BlockSpec((tk, lin_p), kv_map),                   # V
            ],
            out_specs=pl.BlockSpec((tq, lin_p), lambda qi, ki: (qi, 0)),
            scratch_shapes=[
                pltpu.VMEM((tq, _STAT_LANES), jnp.float32),   # running max
                pltpu.VMEM((tq, _STAT_LANES), jnp.float32),   # running denom
                pltpu.VMEM((tq, lin_p), jnp.float32),         # output accumulator
            ],
        ),
        compiler_params=pltpu.CompilerParams(
            dimension_semantics=("parallel", "arbitrary"),
            vmem_limit_bytes=vmem_limit,
        ),
    )(q, k, v)

    # TODO(synk): optionally compute exp in bf16 on v6e/v7x (EUP throughput)
    # when a small accuracy loss is acceptable.
    return out_padded[:, :lin] if pad else out_padded


# --------------------------------------------------------------------------- #
# Reference + test harness                                                     #
# --------------------------------------------------------------------------- #
def _reference(x, y, z, wq, wk, wv, bq, bk, bv, masked=False):
    q = x @ wq + jnp.reshape(bq, (1, -1))
    k = y @ wk + jnp.reshape(bk, (1, -1))
    v = z @ wv + jnp.reshape(bv, (1, -1))
    s = q @ k.T
    if masked:
        s = jnp.where(jnp.triu(jnp.ones_like(s, dtype=bool), k=1), -jnp.inf, s)
    a = jax.nn.softmax(s / math.sqrt(s.shape[0]), axis=-1)
    return a @ v


def _make_inputs(key, seq_q, seq_kv, emb, lin, dtype=jnp.float32):
    kx, ky, kz, kwq, kwk, kwv, kbq, kbk, kbv = jax.random.split(key, 9)
    bound = 1.0 / math.sqrt(emb)
    x = jax.random.normal(kx, (seq_q, emb), dtype=dtype)
    y = jax.random.normal(ky, (seq_kv, emb), dtype=dtype)
    z = jax.random.normal(kz, (seq_kv, emb), dtype=dtype)
    wq = jax.random.uniform(kwq, (emb, lin), dtype, -bound, bound)
    wk = jax.random.uniform(kwk, (emb, lin), dtype, -bound, bound)
    wv = jax.random.uniform(kwv, (emb, lin), dtype, -bound, bound)
    bq = jax.random.uniform(kbq, (1, lin), dtype, -bound, bound)
    bk = jax.random.uniform(kbk, (1, lin), dtype, -bound, bound)
    bv = jax.random.uniform(kbv, (1, lin), dtype, -bound, bound)
    return x, y, z, wq, wk, wv, bq, bk, bv


if __name__ == "__main__":
    key = jax.random.PRNGKey(0)
    k_small, k_big = jax.random.split(key, 2)

    # ---- Small shapes consistent with the module: seq=8, emb=32, linear=16 ----
    args = _make_inputs(k_small, seq_q=8, seq_kv=8, emb=32, lin=16)

    out = jax.block_until_ready(self_attention(*args, masked=False))
    ref = _reference(*args, masked=False)
    assert out.shape == (8, 16)
    assert jnp.allclose(out, ref, atol=1e-5, rtol=1e-5)

    out_m = jax.block_until_ready(self_attention(*args, masked=True))
    ref_m = _reference(*args, masked=True)
    assert jnp.allclose(out_m, ref_m, atol=1e-5, rtol=1e-5)

    # Fused-QKV path (x is y is z).
    x0, _, _, wq0, wk0, wv0, bq0, bk0, bv0 = args
    out_f = jax.block_until_ready(
        self_attention(x0, x0, x0, wq0, wk0, wv0, bq0, bk0, bv0, masked=True))
    ref_f = _reference(x0, x0, x0, wq0, wk0, wv0, bq0, bk0, bv0, masked=True)
    assert jnp.allclose(out_f, ref_f, atol=1e-5, rtol=1e-5)

    # ---- Larger shapes: multi-tile grid, online softmax, causal block skip ----
    args_big = _make_inputs(k_big, seq_q=512, seq_kv=512, emb=64, lin=64)

    out_b = jax.block_until_ready(self_attention(*args_big, masked=False))
    ref_b = _reference(*args_big, masked=False)
    assert out_b.shape == (512, 64)
    assert jnp.allclose(out_b, ref_b, atol=1e-4, rtol=1e-4)

    # 128x128 tiles -> grid (4,4): exercises DMA clamping + pl.when skip +
    # diagonal-only mask application.
    out_bm = jax.block_until_ready(
        self_attention(*args_big, masked=True, q_tile=128, kv_tile=128))
    ref_bm = _reference(*args_big, masked=True)
    assert jnp.allclose(out_bm, ref_bm, atol=1e-4, rtol=1e-4)

    # Default tiles, masked.
    out_bm2 = jax.block_until_ready(self_attention(*args_big, masked=True))
    assert jnp.allclose(out_bm2, ref_bm, atol=1e-4, rtol=1e-4)

    # bf16 path (MXU bf16 operands everywhere; loose tolerance).
    args_bf = tuple(a.astype(jnp.bfloat16) for a in args_big)
    out_bf = jax.block_until_ready(self_attention(*args_bf, masked=False))
    ref_bf = _reference(*(a.astype(jnp.float32) for a in args_bf), masked=False)
    assert out_bf.dtype == jnp.bfloat16
    assert jnp.allclose(out_bf.astype(jnp.float32), ref_bf, atol=3e-2, rtol=5e-2)

    print("KERNEL_OK")
</pallas_src>

<mosaic_0001>
module attributes {stable_mosaic.version = 11 : i64} {
  func.func @_projection_kernel(%arg0: i32, %arg1: memref<8x32xf32, #tpu.memory_space<vmem>>, %arg2: memref<32x128xf32, #tpu.memory_space<vmem>>, %arg3: memref<1x128xf32, #tpu.memory_space<vmem>>, %arg4: memref<8x128xf32, #tpu.memory_space<vmem>>) attributes {dimension_semantics = [#tpu.dimension_semantics<parallel>], iteration_bounds = array<i64: 1>, scalar_prefetch = 0 : i64, scratch_operands = 0 : i64, tpu.core_type = #tpu.core_type<tc>, window_params = [{transform_indices = @transform_0, window_bounds = array<i64: 8, 32>}, {pipeline_mode = #tpu.pipeline_mode<synchronous>, transform_indices = @transform_1, window_bounds = array<i64: 32, 128>}, {pipeline_mode = #tpu.pipeline_mode<synchronous>, transform_indices = @transform_2, window_bounds = array<i64: 1, 128>}, {transform_indices = @transform_3, window_bounds = array<i64: 8, 128>}]} {
    %c0 = arith.constant 0 : index
    %c0_0 = arith.constant 0 : index
    %0 = vector.load %arg1[%c0, %c0_0] : memref<8x32xf32, #tpu.memory_space<vmem>>, vector<8x32xf32>
    %c0_1 = arith.constant 0 : index
    %c0_2 = arith.constant 0 : index
    %1 = vector.load %arg2[%c0_1, %c0_2] : memref<32x128xf32, #tpu.memory_space<vmem>>, vector<32x128xf32>
    %cst = arith.constant dense<0.000000e+00> : vector<8x128xf32>
    %2 = tpu.matmul %0, %1, %cst {dimension_numbers = #tpu.dot_dimension_numbers<[1], [0], [0], [1], [0, 0, 1, 1], [], []>} : vector<8x32xf32>, vector<32x128xf32>, vector<8x128xf32> -> vector<8x128xf32>
    %c0_3 = arith.constant 0 : index
    %c0_4 = arith.constant 0 : index
    %3 = vector.load %arg3[%c0_3, %c0_4] : memref<1x128xf32, #tpu.memory_space<vmem>>, vector<1x128xf32>
    %4 = vector.broadcast %3 : vector<1x128xf32> to vector<8x128xf32>
    %5 = arith.addf %2, %4 : vector<8x128xf32>
    %c0_5 = arith.constant 0 : index
    %c0_6 = arith.constant 0 : index
    %6 = vector.load %arg4[%c0_5, %c0_6] : memref<8x128xf32, #tpu.memory_space<vmem>>, vector<8x128xf32>
    tpu.vector_store %arg4[%c0_5, %c0_6], %5 {strides = array<i32>} : memref<8x128xf32, #tpu.memory_space<vmem>>, vector<8x128xf32>,
    return
  }
  func.func @transform_0(%arg0: i32) -> (i32, i32) {
    %c0_i32 = arith.constant 0 : i32
    %c0_i32_0 = arith.constant 0 : i32
    return %arg0, %c0_i32 : i32, i32
  }
  func.func @transform_1(%arg0: i32) -> (i32, i32) {
    %c0_i32 = arith.constant 0 : i32
    %c0_i32_0 = arith.constant 0 : i32
    %c0_i32_1 = arith.constant 0 : i32
    return %c0_i32, %c0_i32_0 : i32, i32
  }
  func.func @transform_2(%arg0: i32) -> (i32, i32) {
    %c0_i32 = arith.constant 0 : i32
    %c0_i32_0 = arith.constant 0 : i32
    %c0_i32_1 = arith.constant 0 : i32
    return %c0_i32, %c0_i32_0 : i32, i32
  }
  func.func @transform_3(%arg0: i32) -> (i32, i32) {
    %c0_i32 = arith.constant 0 : i32
    %c0_i32_0 = arith.constant 0 : i32
    return %arg0, %c0_i32 : i32, i32
  }
}

</mosaic_0001>

<bundles_post_ra>
// kernel: tpu_custom_call.1
= control target key start
LH: loop header
LB: loop body
LE: loop exit
PB: predicated region body
PF: predicated region fallthrough
CT: control target
= control target key end

     0   :  { %8 = vsyncpa [#allocation3], 0  ;;  %s219_s0 = inlined_call_operand.hbm [shape: f32[8,32], index: 0, kind: input, shape index: {}]   ;;  %s220_s1 = inlined_call_operand.hbm [shape: f32[32,128], index: 1, kind: input, shape index: {}]   ;;  %s221_s2 = inlined_call_operand.vmem [shape: f32[1,128], index: 2, kind: input, shape index: {}]   ;;  %s222_s3 = inlined_call_operand.hbm [shape: f32[8,128], index: 3, kind: output, shape index: {}]  }
   0x1   :  { %9 = vsyncpa [#allocation6], 0 }
   0x2   :  { %10 = vsyncpa [#allocation4], 0  ;;  %s16_s14 = sshll.u32 %s219_s0, 4  ;;  %s182_s15 = smov [#allocation2]   ;;  %s17_s14 = int_to_ptr.hbm [resolvable:$true] %s16_s14 }
   0x3   :  { %s18_s16 = sshll.u32 %s182_s15, 4  ;;  %s26_s19 = sshll.u32 %s220_s1, 4  ;;  %s19_s16 = int_to_ptr.vmem [resolvable:$true] %s18_s16  ;;  %s27_s19 = int_to_ptr.hbm [resolvable:$true] %s26_s19 }
   0x4   :  { %21 = dma.hbm_to_vmem [thread:$0]  %s17_s14, 128, %s19_s16, [#allocation3]  }
   0x5   :  { %s183_s20 = smov [#allocation5]   ;;  %s184_s22 = smov 128  }
   0x6   :  { %s28_s21 = sshll.u32 %s183_s20, 4  ;;  %s185_s23 = smov 8   ;;  %s29_s21 = int_to_ptr.vmem [resolvable:$true] %s28_s21 }
   0x7   :  { %34 = dma.hbm_to_vmem [thread:$0]  %s27_s19, 512, %s29_s21, [#allocation6], %s184_s22, %s184_s22, %s185_s23  }
   0x8   :  { %176 = dma.done.wait [#allocation3], 128  }
   0x9   :  { %177 = vsyncadd [#allocation3], 4294967168 }
   0xa   :  { %178 = dma.done.wait [#allocation6], 512  }
   0xb   :  { %179 = vsyncadd [#allocation6], 4294966784  ;;  %v49_v0 = vld [vmem:[#allocation5 + $0x18] sm:$0xff]  ;;  %v48_v1 = vld [vmem:[#allocation5 + $0x10] sm:$0xff]  ;;  %vm54_vm0 = vcmask 261120   ;;  %s186_s24 = smov [#allocation7]  }
   0xc   :  { %70 = vmatpush.msra.mxu0 %v49_v0  ;;  %v47_v2 = vld [vmem:[#allocation5 + $0x8] sm:$0xff]  ;;  %v46_v3 = vld [vmem:[#allocation5] sm:$0xff]  ;;  %v45_v4 = vld [vmem:[#allocation2] sm:$0xff]  ;;  %s84_s25 = sshll.u32 %s186_s24, 4  ;;  %s86_s28 = sshll.u32 %s222_s3, 4  ;;  %s85_s25 = int_to_ptr.vmem [resolvable:$true] %s84_s25  ;;  %s87_s28 = int_to_ptr.hbm [resolvable:$true] %s86_s28 }
   0xd   :  { %v103_v5 = vld [vmem:[%s221_s2] ss:$0 sm:$0xff] }
   0xe   :  { %71 = vmatpush.msra.mxu0 %v48_v1 }
  0x10   :  { %72 = vmatpush.msra.mxu0 %v47_v2 }
  0x12   :  { %73 = vmatpush.msra.mxu0 %v46_v3 }
  0x13   :  { %97 = vmatmul.msk.f32.vlgmr.msra.gmra.mxu0 %vm54_vm0, %v45_v4 }
  0x90   :  { %v75_v6 = vpop.f32.mrf.mxu0 }
  0x91   :  { %v76_v7 = vadd.f32 %v103_v5, %v75_v6 }
  0x93   :  { %78 = vst [vmem:[#allocation7] sm:$0xff] %v76_v7 }
  0x94   :  { %89 = dma.vmem_to_hbm [thread:$0]  %s85_s25, 128, %s87_s28, [#allocation4]  }
  0x95   :  { %180 = dma.done.wait [#allocation4], 128  }
  0x96   :  { %181 = vsyncadd [#allocation4], 4294967168 }
  0x97   :  { %94 = vsyncpa [#allocation3], 1 }
  0x98   :  { %95 = vsyncpa [#allocation6], 1 }
  0x99   :  { %96 = vsyncpa [#allocation4], 1 }

</bundles_post_ra>
